<compile_context>
chip_gen: v6e
topology: v6e:2x2x1
jax: 0.10.0
libtpu: 0.0.40
codegen_flags: <defaults>
</compile_context>

<pallas_src>
import jax
import jax.numpy as jnp
from jax.experimental import pallas as pl
from jax.experimental.pallas import tpu as pltpu

LANE = 128       # padded hidden width (lane-dense for the two hidden matmuls)
ROW_ALIGN = 16   # bf16 sublane pack -> (16, 128) tiles


def _round_up(n, m):
    return ((n + m - 1) // m) * m


def _mlp_kernel(x_ref, w1_ref, b1_ref, w2_ref, b2_ref, w3_ref, b3_ref, o_ref):
    # Cast f32 activations to bf16 on the fly; MXU matmuls accumulate in f32,
    # bias-add / ReLU stay f32 (v5e VPU has no bf16).
    x = x_ref[...].astype(jnp.bfloat16)
    h1 = jnp.dot(x, w1_ref[...], preferred_element_type=jnp.float32)
    h1 = jnp.maximum(h1 + b1_ref[...], 0.0)
    h2 = jnp.dot(h1.astype(jnp.bfloat16), w2_ref[...],
                 preferred_element_type=jnp.float32)
    h2 = jnp.maximum(h2 + b2_ref[...], 0.0)
    out = jnp.dot(h2.astype(jnp.bfloat16), w3_ref[...],
                  preferred_element_type=jnp.float32)
    o_ref[...] = (out + b3_ref[...]).astype(o_ref.dtype)


def init_params(key, n_features, n_classes):
    """Deterministic PyTorch-like (Kaiming-uniform) init for the 3 Linear layers.

    Weights stored as [in_features, out_features] (transposed vs PyTorch),
    biases as [1, out_features]."""
    dims = [(n_features, 64), (64, 32), (32, n_classes)]
    params = {}
    for i, (fan_in, fan_out) in enumerate(dims, start=1):
        key, kw, kb = jax.random.split(key, 3)
        bound = 1.0 / jnp.sqrt(jnp.float32(fan_in))
        params[f"w{i}"] = jax.random.uniform(
            kw, (fan_in, fan_out), jnp.float32, -bound, bound)
        params[f"b{i}"] = jax.random.uniform(
            kb, (1, fan_out), jnp.float32, -bound, bound)
    return params


def pad_params(params, n_classes):
    """One-time preprocessing: zero-pad hidden dims to 128 lanes and the class dim
    to a narrow multiple of 8; cast weights to bf16 (MXU inputs), keep biases f32."""
    assert params["w1"].shape[1] == 64, "hidden-1 must be 64"
    assert params["w2"].shape == (64, 32), "hidden-2 must be 32"
    assert params["w3"].shape == (32, n_classes)
    assert 1 <= n_classes <= 2048, "n_classes out of supported range"

    c_pad = _round_up(n_classes, 8)

    def pad2(a, rows, cols):
        return jnp.pad(a, ((0, rows - a.shape[0]), (0, cols - a.shape[1])))

    f = params["w1"].shape[0]
    return {
        "w1": pad2(params["w1"], f, LANE).astype(jnp.bfloat16),
        "b1": pad2(params["b1"], 1, LANE).astype(jnp.float32),
        "w2": pad2(params["w2"], LANE, LANE).astype(jnp.bfloat16),
        "b2": pad2(params["b2"], 1, LANE).astype(jnp.float32),
        "w3": pad2(params["w3"], LANE, c_pad).astype(jnp.bfloat16),
        "b3": pad2(params["b3"], 1, c_pad).astype(jnp.float32),
    }


def decision_tree_forward(x, padded_params, n_classes, tile_b=8192):
    """x: [B, n_features] float32. Returns [B, n_classes] float32."""
    B, F = x.shape
    p = padded_params
    w1, b1, w2, b2, w3, b3 = (p[k] for k in ("w1", "b1", "w2", "b2", "w3", "b3"))
    assert w1.shape[0] == F, "x feature dim must match w1"
    c_pad = w3.shape[1]
    assert c_pad >= n_classes

    # --- tile-size selection -------------------------------------------------
    # Keep the (double-buffered) f32 x tile <= ~4 MiB so the whole working set
    # stays well inside every generation's VMEM (v7x physical is only 64 MiB).
    vmem_cap_rows = max(ROW_ALIGN, ((4 << 20) // (F * 4)) // ROW_ALIGN * ROW_ALIGN)
    tile_b = min(tile_b, vmem_cap_rows)
    # Give v7x megacore >= 2-4 grid steps to shard across its two TensorCores
    # (for tiny batches this collapses to a single 16-row tile, which is fine).
    quarter = _round_up(max((B + 3) // 4, 1), ROW_ALIGN)
    tile_b = max(ROW_ALIGN, min(tile_b, quarter))
    tile_b = _round_up(tile_b, ROW_ALIGN)

    b_pad = _round_up(B, tile_b)
    if b_pad != B:
        x = jnp.pad(x, ((0, b_pad - B), (0, 0)))

    resident = lambda a: pl.BlockSpec(a.shape, lambda i: (0, 0))  # stays in VMEM

    flops = 2 * b_pad * (F * LANE + LANE * LANE + LANE * c_pad)
    bytes_accessed = (
        b_pad * F * 4                      # x (f32, read once by the kernel)
        + b_pad * c_pad * 4                # out (narrow f32)
        + sum(int(a.size) * a.dtype.itemsize for a in (w1, b1, w2, b2, w3, b3))
    )

    out = pl.pallas_call(
        _mlp_kernel,
        out_shape=jax.ShapeDtypeStruct((b_pad, c_pad), jnp.float32),
        grid=(b_pad // tile_b,),
        in_specs=[
            pl.BlockSpec((tile_b, F), lambda i: (i, 0)),
            resident(w1), resident(b1),
            resident(w2), resident(b2),
            resident(w3), resident(b3),
        ],
        out_specs=pl.BlockSpec((tile_b, c_pad), lambda i: (i, 0)),
        compiler_params=pltpu.CompilerParams(
            dimension_semantics=("parallel",),
            vmem_limit_bytes=48 * 1024 * 1024),
        cost_estimate=pl.CostEstimate(
            flops=flops, transcendentals=0, bytes_accessed=bytes_accessed),
    )(x, w1, b1, w2, b2, w3, b3)

    return out[:B, :n_classes]


def _reference(x, padded_params, n_classes):
    """Mirrors kernel precision (bf16-rounded matmul inputs, f32 accumulate)."""
    f32 = lambda a: a.astype(jnp.float32)
    bf = lambda a: a.astype(jnp.bfloat16).astype(jnp.float32)
    p = padded_params
    h1 = jnp.maximum(bf(x) @ f32(p["w1"]) + p["b1"], 0.0)
    h2 = jnp.maximum(bf(h1) @ f32(p["w2"]) + p["b2"], 0.0)
    out = bf(h2) @ f32(p["w3"]) + p["b3"]
    return out[:, :n_classes]


if __name__ == "__main__":
    key = jax.random.PRNGKey(0)
    n_features, n_classes, batch = 32, 10, 8
    kx, kp = jax.random.split(key)
    x = jax.random.normal(kx, (batch, n_features), jnp.float32)
    params = init_params(kp, n_features, n_classes)
    padded = pad_params(params, n_classes)

    out = decision_tree_forward(x, padded, n_classes)
    out = jax.block_until_ready(out)

    ref = _reference(x, padded, n_classes)
    assert out.shape == (batch, n_classes)
    assert jnp.allclose(out, ref, atol=1e-3, rtol=1e-3), "mismatch vs reference"
    print("KERNEL_OK")
</pallas_src>

<mosaic_0001>
module attributes {stable_mosaic.version = 11 : i64} {
  func.func @_mlp_kernel(%arg0: i32, %arg1: memref<16x32xf32, #tpu.memory_space<vmem>>, %arg2: memref<32x128xbf16, #tpu.memory_space<vmem>>, %arg3: memref<1x128xf32, #tpu.memory_space<vmem>>, %arg4: memref<128x128xbf16, #tpu.memory_space<vmem>>, %arg5: memref<1x128xf32, #tpu.memory_space<vmem>>, %arg6: memref<128x16xbf16, #tpu.memory_space<vmem>>, %arg7: memref<1x16xf32, #tpu.memory_space<vmem>>, %arg8: memref<16x16xf32, #tpu.memory_space<vmem>>) attributes {dimension_semantics = [#tpu.dimension_semantics<parallel>], iteration_bounds = array<i64: 1>, scalar_prefetch = 0 : i64, scratch_operands = 0 : i64, tpu.core_type = #tpu.core_type<tc>, window_params = [{transform_indices = @transform_0, window_bounds = array<i64: 16, 32>}, {pipeline_mode = #tpu.pipeline_mode<synchronous>, transform_indices = @transform_1, window_bounds = array<i64: 32, 128>}, {pipeline_mode = #tpu.pipeline_mode<synchronous>, transform_indices = @transform_2, window_bounds = array<i64: 1, 128>}, {pipeline_mode = #tpu.pipeline_mode<synchronous>, transform_indices = @transform_3, window_bounds = array<i64: 128, 128>}, {pipeline_mode = #tpu.pipeline_mode<synchronous>, transform_indices = @transform_4, window_bounds = array<i64: 1, 128>}, {pipeline_mode = #tpu.pipeline_mode<synchronous>, transform_indices = @transform_5, window_bounds = array<i64: 128, 16>}, {pipeline_mode = #tpu.pipeline_mode<synchronous>, transform_indices = @transform_6, window_bounds = array<i64: 1, 16>}, {transform_indices = @transform_7, window_bounds = array<i64: 16, 16>}]} {
    %c0 = arith.constant 0 : index
    %c0_0 = arith.constant 0 : index
    %0 = vector.load %arg1[%c0, %c0_0] : memref<16x32xf32, #tpu.memory_space<vmem>>, vector<16x32xf32>
    %1 = arith.truncf %0 : vector<16x32xf32> to vector<16x32xbf16>
    %c0_1 = arith.constant 0 : index
    %c0_2 = arith.constant 0 : index
    %2 = vector.load %arg2[%c0_1, %c0_2] : memref<32x128xbf16, #tpu.memory_space<vmem>>, vector<32x128xbf16>
    %cst = arith.constant dense<0.000000e+00> : vector<16x128xf32>
    %3 = tpu.matmul %1, %2, %cst {dimension_numbers = #tpu.dot_dimension_numbers<[1], [0], [0], [1], [0, 0, 1, 1], [], []>} : vector<16x32xbf16>, vector<32x128xbf16>, vector<16x128xf32> -> vector<16x128xf32>
    %c0_3 = arith.constant 0 : index
    %c0_4 = arith.constant 0 : index
    %4 = vector.load %arg3[%c0_3, %c0_4] : memref<1x128xf32, #tpu.memory_space<vmem>>, vector<1x128xf32>
    %5 = vector.broadcast %4 : vector<1x128xf32> to vector<16x128xf32>
    %6 = arith.addf %3, %5 : vector<16x128xf32>
    %cst_5 = arith.constant 0.000000e+00 : f32
    %7 = vector.broadcast %cst_5 : f32 to vector<16x128xf32>
    %8 = arith.maximumf %6, %7 : vector<16x128xf32>
    %9 = arith.truncf %8 : vector<16x128xf32> to vector<16x128xbf16>
    %c0_6 = arith.constant 0 : index
    %c0_7 = arith.constant 0 : index
    %10 = vector.load %arg4[%c0_6, %c0_7] : memref<128x128xbf16, #tpu.memory_space<vmem>>, vector<128x128xbf16>
    %cst_8 = arith.constant dense<0.000000e+00> : vector<16x128xf32>
    %11 = tpu.matmul %9, %10, %cst_8 {dimension_numbers = #tpu.dot_dimension_numbers<[1], [0], [0], [1], [0, 0, 1, 1], [], []>} : vector<16x128xbf16>, vector<128x128xbf16>, vector<16x128xf32> -> vector<16x128xf32>
    %c0_9 = arith.constant 0 : index
    %c0_10 = arith.constant 0 : index
    %12 = vector.load %arg5[%c0_9, %c0_10] : memref<1x128xf32, #tpu.memory_space<vmem>>, vector<1x128xf32>
    %13 = vector.broadcast %12 : vector<1x128xf32> to vector<16x128xf32>
    %14 = arith.addf %11, %13 : vector<16x128xf32>
    %cst_11 = arith.constant 0.000000e+00 : f32
    %15 = vector.broadcast %cst_11 : f32 to vector<16x128xf32>
    %16 = arith.maximumf %14, %15 : vector<16x128xf32>
    %17 = arith.truncf %16 : vector<16x128xf32> to vector<16x128xbf16>
    %c0_12 = arith.constant 0 : index
    %c0_13 = arith.constant 0 : index
    %18 = vector.load %arg6[%c0_12, %c0_13] : memref<128x16xbf16, #tpu.memory_space<vmem>>, vector<128x16xbf16>
    %cst_14 = arith.constant dense<0.000000e+00> : vector<16x16xf32>
    %19 = tpu.matmul %17, %18, %cst_14 {dimension_numbers = #tpu.dot_dimension_numbers<[1], [0], [0], [1], [0, 0, 1, 1], [], []>} : vector<16x128xbf16>, vector<128x16xbf16>, vector<16x16xf32> -> vector<16x16xf32>
    %c0_15 = arith.constant 0 : index
    %c0_16 = arith.constant 0 : index
    %20 = vector.load %arg7[%c0_15, %c0_16] : memref<1x16xf32, #tpu.memory_space<vmem>>, vector<1x16xf32>
    %21 = vector.broadcast %20 : vector<1x16xf32> to vector<16x16xf32>
    %22 = arith.addf %19, %21 : vector<16x16xf32>
    %c0_17 = arith.constant 0 : index
    %c0_18 = arith.constant 0 : index
    %23 = vector.load %arg8[%c0_17, %c0_18] : memref<16x16xf32, #tpu.memory_space<vmem>>, vector<16x16xf32>
    tpu.vector_store %arg8[%c0_17, %c0_18], %22 {strides = array<i32>} : memref<16x16xf32, #tpu.memory_space<vmem>>, vector<16x16xf32>,
    return
  }
  func.func @transform_0(%arg0: i32) -> (i32, i32) {
    %c0_i32 = arith.constant 0 : i32
    %c0_i32_0 = arith.constant 0 : i32
    return %arg0, %c0_i32 : i32, i32
  }
  func.func @transform_1(%arg0: i32) -> (i32, i32) {
    %c0_i32 = arith.constant 0 : i32
    %c0_i32_0 = arith.constant 0 : i32
    %c0_i32_1 = arith.constant 0 : i32
    return %c0_i32, %c0_i32_0 : i32, i32
  }
  func.func @transform_2(%arg0: i32) -> (i32, i32) {
    %c0_i32 = arith.constant 0 : i32
    %c0_i32_0 = arith.constant 0 : i32
    %c0_i32_1 = arith.constant 0 : i32
    return %c0_i32, %c0_i32_0 : i32, i32
  }
  func.func @transform_3(%arg0: i32) -> (i32, i32) {
    %c0_i32 = arith.constant 0 : i32
    %c0_i32_0 = arith.constant 0 : i32
    %c0_i32_1 = arith.constant 0 : i32
    return %c0_i32, %c0_i32_0 : i32, i32
  }
  func.func @transform_4(%arg0: i32) -> (i32, i32) {
    %c0_i32 = arith.constant 0 : i32
    %c0_i32_0 = arith.constant 0 : i32
    %c0_i32_1 = arith.constant 0 : i32
    return %c0_i32, %c0_i32_0 : i32, i32
  }
  func.func @transform_5(%arg0: i32) -> (i32, i32) {
    %c0_i32 = arith.constant 0 : i32
    %c0_i32_0 = arith.constant 0 : i32
    %c0_i32_1 = arith.constant 0 : i32
    return %c0_i32, %c0_i32_0 : i32, i32
  }
  func.func @transform_6(%arg0: i32) -> (i32, i32) {
    %c0_i32 = arith.constant 0 : i32
    %c0_i32_0 = arith.constant 0 : i32
    %c0_i32_1 = arith.constant 0 : i32
    return %c0_i32, %c0_i32_0 : i32, i32
  }
  func.func @transform_7(%arg0: i32) -> (i32, i32) {
    %c0_i32 = arith.constant 0 : i32
    %c0_i32_0 = arith.constant 0 : i32
    return %arg0, %c0_i32 : i32, i32
  }
}

</mosaic_0001>

<bundles_post_ra>
// kernel: tpu_custom_call.1
= control target key start
LH: loop header
LB: loop body
LE: loop exit
PB: predicated region body
PF: predicated region fallthrough
CT: control target
= control target key end

     0   :  { %12 = vsyncpa [#allocation3], 0  ;;  %s707_s0 = inlined_call_operand.hbm [shape: f32[16,32], index: 0, kind: input, shape index: {}]   ;;  %s708_s1 = inlined_call_operand.hbm [shape: bf16[32,128], index: 1, kind: input, shape index: {}]   ;;  %s709_s2 = inlined_call_operand.vmem [shape: f32[1,128], index: 2, kind: input, shape index: {}]   ;;  %s710_s3 = inlined_call_operand.vmem [shape: bf16[128,128], index: 3, kind: input, shape index: {}]   ;;  %s711_s4 = inlined_call_operand.vmem [shape: f32[1,128], index: 4, kind: input, shape index: {}]   ;;  %s712_s5 = inlined_call_operand.vmem [shape: bf16[128,16], index: 5, kind: input, shape index: {}]   ;;  %s713_s6 = inlined_call_operand.vmem [shape: f32[1,16], index: 6, kind: input, shape index: {}]   ;;  %s714_s7 = inlined_call_operand.hbm [shape: f32[16,16], index: 7, kind: output, shape index: {}]  }
   0x1   :  { %13 = vsyncpa [#allocation6], 0 }
   0x2   :  { %14 = vsyncpa [#allocation4], 0  ;;  %s562_s24 = smov [#allocation2]  }
   0x3   :  { %s20_s25 = sshll.u32 %s562_s24, 4  ;;  %s21_s25 = int_to_ptr.vmem [resolvable:$true] %s20_s25 }
   0x4   :  { %s504_s26 = scalar_lea.vmem %s21_s25, 256  ;;  %p509_p1 = scmp.lt.s32.totalorder %s21_s25, %s21_s25 }
   0x5   :  { %p505_p0 = scmp.ne.s32.totalorder %s21_s25, %s504_s26  ;;  %p510_p2 = scmp.lt.s32.totalorder %s504_s26, %s504_s26 }
   0x7   :  { %p511_p3 = por %p510_p2, %p509_p1 }
   0x9   :  { %p512_p4 = pnand %p511_p3, %p505_p0 }
   0xb   :  { %515 = shalt.err (!%p512_p4)
}
   0xc   :  { %s563_s27 = smov 128   ;;  %s564_s28 = smov 8  }
   0xd   :  { %26 = dma.hbm_to_vmem [thread:$0]  %s707_s0, 256, %s21_s25, [#allocation3], %s563_s27, %s563_s27, %s564_s28  }
   0xe   :  { %s565_s8 = smov [#allocation5]  }
   0xf   :  { %s32_s9 = sshll.u32 %s565_s8, 4  ;;  %s33_s9 = int_to_ptr.vmem [resolvable:$true] %s32_s9 }
  0x10   :  { %s524_s10 = scalar_lea.vmem %s33_s9, 256  ;;  %p529_p6 = scmp.lt.s32.totalorder %s33_s9, %s33_s9 }
  0x11   :  { %p525_p5 = scmp.ne.s32.totalorder %s33_s9, %s524_s10  ;;  %p530_p7 = scmp.lt.s32.totalorder %s524_s10, %s524_s10 }
  0x13   :  { %p531_p8 = por %p530_p7, %p529_p6 }
  0x15   :  { %p532_p9 = pnand %p531_p8, %p525_p5 }
  0x17   :  { %535 = shalt.err (!%p532_p9)
}
  0x18   :  { %s566_s11 = smov 64   ;;  %s567_s12 = smov 4  }
  0x19   :  { %38 = dma.hbm_to_vmem [thread:$0]  %s708_s1, 256, %s33_s9, [#allocation6], %s566_s11, %s566_s11, %s567_s12  }
  0x1a   :  { %556 = dma.done.wait [#allocation3], 256  }
  0x1b   :  { %557 = vsyncadd [#allocation3], 4294967040 }
  0x1c   :  { %558 = dma.done.wait [#allocation6], 256  }
  0x1d   :  { %559 = vsyncadd [#allocation6], 4294967040  ;;  %v568_v0 = vmov 0.0   ;;  %vm569_vm0 = vmmov 0   ;;  %v478_v1 = vld [vmem:[#allocation5 + $0x8] sm:$0xff]   ;;  %v479_v2 = vld [vmem:[#allocation5] sm:$0xff]  }
  0x1e   :  { %421 = vmatprep.subr.bf16.mxu0 %v568_v0  ;;  %425 = vmatprep.mubr.msk.bf16.mxu0 %vm569_vm0, %v568_v0  ;;  %v56_v3 = vld [vmem:[#allocation2] sm:$0xff]  ;;  %v57_v4 = vld [vmem:[#allocation2 + $0x8] sm:$0xff]  ;;  %v480_v5 = vld [vmem:[%s710_s3 + $0x38] sm:$0xff]   ;;  %vm82_vm1 = vcmask 261120   ;;  %vm357_vm2 = vcmask 130048  }
  0x1f   :  { %429 = vmatprep.subr.bf16.mxu1 %v568_v0  ;;  %445 = vmatprep.mubr.msk.bf16.mxu1 %vm569_vm0, %v568_v0  ;;  %v58_v6 = vpack.c.bf16 %v57_v4, %v56_v3  ;;  %v481_v7 = vld [vmem:[%s710_s3 + $0x30] sm:$0xff]   ;;  %v482_v8 = vld [vmem:[%s710_s3 + $0x28] sm:$0xff]   ;;  %v483_v9 = vld [vmem:[%s710_s3 + $0x20] sm:$0xff]  }
  0x20   :  { %422 = vmatpush3.bf16.msra.mxu0 %v478_v1  ;;  %430 = vmatpush3.bf16.msra.mxu1 %v480_v5  ;;  %v484_v10 = vld [vmem:[%s710_s3 + $0x18] sm:$0xff]   ;;  %v485_v11 = vld [vmem:[%s710_s3 + $0x10] sm:$0xff]   ;;  %v486_v12 = vld [vmem:[%s710_s3 + $0x8] sm:$0xff]  }
  0x21   :  { %423 = vmatprep.subr.bf16.mxu0 %v568_v0  ;;  %431 = vmatprep.subr.bf16.mxu1 %v568_v0  ;;  %v487_v13 = vld [vmem:[%s710_s3] sm:$0xff]   ;;  %v488_v14 = vld [vmem:[%s712_s5 + $0x38] sm:$0xff]   ;;  %v489_v15 = vld [vmem:[%s712_s5 + $0x30] sm:$0xff]  }
  0x22   :  { %v490_v16 = vld [vmem:[%s712_s5 + $0x28] sm:$0xff]   ;;  %v491_v17 = vld [vmem:[%s712_s5 + $0x20] sm:$0xff]   ;;  %v492_v18 = vld [vmem:[%s712_s5 + $0x18] sm:$0xff]  }
  0x23   :  { %v378_v19 = vld [vmem:[%s709_s2] ss:$0 sm:$0xff]  ;;  %v493_v29 = vld [vmem:[%s712_s5 + $0x10] sm:$0xff]   ;;  %v494_v30 = vld [vmem:[%s712_s5 + $0x8] sm:$0xff]  }
  0x24   :  { %424 = vmatpush3.bf16.msra.mxu0 %v479_v2  ;;  %432 = vmatpush3.bf16.msra.mxu1 %v481_v7  ;;  %v495_v31 = vld [vmem:[%s712_s5] sm:$0xff]   ;;  %s570_s5 = smov [#allocation7]  }
  0x25   :  { %449 = vmatprep.subr.bf16.mxu0 %v568_v0  ;;  %433 = vmatprep.subr.bf16.mxu1 %v568_v0  ;;  %v382_v32 = vld [vmem:[%s711_s4] ss:$0 sm:$0xff]  ;;  %s365_s4 = sshll.u32 %s570_s5, 4  ;;  %s366_s4 = int_to_ptr.vmem [resolvable:$true] %s365_s4 }
  0x26   :  { %v391_v42 = vld [vmem:[%s713_s6] ss:$0 sm:$0xff]  ;;  %s536_s26 = scalar_lea.vmem %s366_s4, 256  ;;  %p541_p11 = scmp.lt.s32.totalorder %s366_s4, %s366_s4 }
  0x27   :  { %426 = vmatmul.mubr.msk.bf16.vlgmr.msra.gmra.mxu0 %vm82_vm1, %v58_v6  ;;  %p537_p10 = scmp.ne.s32.totalorder %s366_s4, %s536_s26  ;;  %p542_p12 = scmp.lt.s32.totalorder %s536_s26, %s536_s26 }
  0x28   :  { %465 = vmatprep.mubr.msk.bf16.mxu0 %vm569_vm0, %v568_v0  ;;  %434 = vmatpush3.bf16.msra.mxu1 %v482_v8 }
  0x29   :  { %435 = vmatprep.subr.bf16.mxu1 %v568_v0  ;;  %450 = vmatpush3.bf16.msra.mxu0 %v488_v14  ;;  %p543_p13 = por %p542_p12, %p541_p11 }
  0x2a   :  { %451 = vmatprep.subr.bf16.mxu0 %v568_v0 }
  0x2b   :  { %p544_p0 = pnand %p543_p13, %p537_p10 }
  0x2c   :  { %436 = vmatpush3.bf16.msra.mxu1 %v483_v9 }
  0x2d   :  { %437 = vmatprep.subr.bf16.mxu1 %v568_v0  ;;  %452 = vmatpush3.bf16.msra.mxu0 %v489_v15 }
  0x2e   :  { %453 = vmatprep.subr.bf16.mxu0 %v568_v0 }
  0x30   :  { %438 = vmatpush3.bf16.msra.mxu1 %v484_v10 }
  0x31   :  { %439 = vmatprep.subr.bf16.mxu1 %v568_v0  ;;  %454 = vmatpush3.bf16.msra.mxu0 %v490_v16 }
  0x32   :  { %455 = vmatprep.subr.bf16.mxu0 %v568_v0 }
  0x34   :  { %440 = vmatpush3.bf16.msra.mxu1 %v485_v11 }
  0x35   :  { %441 = vmatprep.subr.bf16.mxu1 %v568_v0  ;;  %456 = vmatpush3.bf16.msra.mxu0 %v491_v17 }
  0x36   :  { %457 = vmatprep.subr.bf16.mxu0 %v568_v0 }
  0x38   :  { %442 = vmatpush3.bf16.msra.mxu1 %v486_v12 }
  0x39   :  { %443 = vmatprep.subr.bf16.mxu1 %v568_v0  ;;  %458 = vmatpush3.bf16.msra.mxu0 %v492_v18 }
  0x3a   :  { %459 = vmatprep.subr.bf16.mxu0 %v568_v0 }
  0x3c   :  { %444 = vmatpush3.bf16.msra.mxu1 %v487_v13 }
  0x3d   :  { %460 = vmatpush3.bf16.msra.mxu0 %v493_v29 }
  0x3e   :  { %461 = vmatprep.subr.bf16.mxu0 %v568_v0 }
  0x41   :  { %462 = vmatpush3.bf16.msra.mxu0 %v494_v30 }
  0x42   :  { %463 = vmatprep.subr.bf16.mxu0 %v568_v0 }
  0x45   :  { %464 = vmatpush3.bf16.msra.mxu0 %v495_v31 }
  0xe7   :  { %v120_v20 = vpop.f32.mrf.mxu0 }
  0xe8   :  { %v121_v22 = vadd.f32 %v378_v19, %v120_v20 }
  0xe9   :  { %v427_v21 = vpop.f32.mrf.mxu0 }
  0xea   :  { %v127_v26 = vmax.f32 %v121_v22, 0.0 }
  0xeb   :  { %v123_v23 = vpop.f32.mrf.mxu0 }
  0xec   :  { %v124_v24 = vadd.f32 %v378_v19, %v123_v23 }
  0xed   :  { %v428_v25 = vpop.f32.mrf.mxu0 }
  0xee   :  { %v128_v27 = vmax.f32 %v124_v24, 0.0 }
  0xf0   :  { %v129_v28 = vpack.c.bf16 %v128_v27, %v127_v26 }
  0xf2   :  { %446 = vmatmul.mubr.bf16.vlgmr.msra.gmra.mxu1 %v129_v28 }
 0x1b2   :  { %v235_v33 = vpop.f32.mrf.mxu1 }
 0x1b3   :  { %v236_v35 = vadd.f32 %v382_v32, %v235_v33 }
 0x1b4   :  { %v447_v34 = vpop.f32.mrf.mxu1 }
 0x1b5   :  { %v242_v39 = vmax.f32 %v236_v35, 0.0 }
 0x1b6   :  { %v238_v36 = vpop.f32.mrf.mxu1 }
 0x1b7   :  { %v239_v37 = vadd.f32 %v382_v32, %v238_v36 }
 0x1b8   :  { %v448_v38 = vpop.f32.mrf.mxu1 }
 0x1b9   :  { %v243_v40 = vmax.f32 %v239_v37, 0.0 }
 0x1bb   :  { %v244_v41 = vpack.c.bf16 %v243_v40, %v242_v39 }
 0x1bd   :  { %466 = vmatmul.mubr.bf16.vlgmr.msra.gmra.mxu0 %v244_v41 }
 0x27d   :  { %v350_v43 = vpop.f32.mrf.mxu0 }
 0x27e   :  { %v351_v44 = vadd.f32 %v391_v42, %v350_v43 }
 0x27f   :  { %v467_v45 = vpop.f32.mrf.mxu0 }
 0x280   :  { %358 = vst.msk [vmem:[#allocation7] sm:$0xff] %vm357_vm2, %v351_v44 }
 0x281   :  { %v353_v46 = vpop.f32.mrf.mxu0 }
 0x282   :  { %v354_v47 = vadd.f32 %v391_v42, %v353_v46 }
 0x283   :  { %v468_v48 = vpop.f32.mrf.mxu0 }
 0x284   :  { %359 = vst.msk [vmem:[#allocation7 + $0x8] sm:$0xff] %vm357_vm2, %v354_v47 }
 0x285   :  { %547 = shalt.err (!%p544_p0)
}
 0x286   :  { %371 = dma.vmem_to_hbm [thread:$0]  %s366_s4, 256, %s714_s7, [#allocation4], %s563_s27, %s563_s27, %s564_s28  }
 0x287   :  { %560 = dma.done.wait [#allocation4], 256  }
 0x288   :  { %561 = vsyncadd [#allocation4], 4294967040 }
 0x289   :  { %375 = vsyncpa [#allocation3], 1 }
 0x28a   :  { %376 = vsyncpa [#allocation6], 1 }
 0x28b   :  { %377 = vsyncpa [#allocation4], 1 }

</bundles_post_ra>
